<compile_context>
chip_gen: v5e
topology: v5e:2x2
jax: 0.10.0
libtpu: 0.0.40
codegen_flags: <defaults>
</compile_context>

<pallas_src>
import functools

import jax
import jax.numpy as jnp
from jax.experimental import pallas as pl
from jax.experimental.pallas import tpu as pltpu


def _round_up(x, m):
    return (x + m - 1) // m * m


def _patch_embed_kernel(p_ref, w_ref, b_ref, o_ref):
    # p_ref: (tm, K_pad) patch rows, w_ref: (K_pad, tn) weight, b_ref: (1, tn) f32 bias.
    acc = jnp.dot(p_ref[...], w_ref[...], preferred_element_type=jnp.float32)
    o_ref[...] = (acc + b_ref[...]).astype(o_ref.dtype)


def prepare_patch_embed_params(weight, bias):
    """One-time (init-time) packing of the Conv2d parameters.

    weight: (hidden, C, P, P) -> (K_pad, N_pad), column order (c, ph, pw),
            zero-padded so K_pad % 128 == 0 and N_pad % 128 == 0 (lane dense).
    bias:   (hidden,) -> (1, N_pad) float32.
    Done once outside the forward path so no transpose sits in the hot loop.
    """
    n, c, p, _ = weight.shape
    k = c * p * p
    k_pad = _round_up(k, 128)
    n_pad = _round_up(n, 128)
    w = weight.reshape(n, k).T                       # (K, N) — matches PyTorch flatten order
    w = jnp.pad(w, ((0, k_pad - k), (0, n_pad - n)))
    b = jnp.pad(bias.astype(jnp.float32), (0, n_pad - n)).reshape(1, n_pad)
    return w, b


def _select_tiles(m_pad8, k_pad, n_pad, itemsize):
    """Pick (tm, tn) so the double-buffered working set stays under ~24 MiB
    (safe on v7x's 64 MiB VMEM, comfortably inside v5e/v6e's 128 MiB)."""
    budget = 24 * 1024 * 1024
    tn = 256 if n_pad % 256 == 0 else 128
    tn = min(tn, n_pad)

    def need(tm):
        # 2x: pipeline double-buffering of every operand/result tile.
        return 2 * itemsize * (tm * k_pad + k_pad * tn + tm * tn) + 2 * 4 * tn

    tm = min(256, m_pad8)          # multiple of 8; 256 suits both 128- and 256-wide MXUs
    while tm > 8 and need(tm) > budget:
        tm -= 8
    return tm, tn, need(tm)


@functools.partial(jax.jit, static_argnames=("patch_size", "hidden_channels"))
def full_per_patch(x, w_kn, b_1n, *, patch_size, hidden_channels):
    """x: (B, C, H, W) NCHW. w_kn/b_1n from prepare_patch_embed_params."""
    B, C, H, W = x.shape
    P = patch_size
    S1, S2 = H // P, W // P
    K = C * P * P
    M = B * S1 * S2
    N = hidden_channels
    K_pad, N_pad = w_kn.shape

    itemsize = jnp.dtype(x.dtype).itemsize
    tm, tn, need = _select_tiles(_round_up(M, 8), K_pad, N_pad, itemsize)
    M_pad = _round_up(M, tm)

    # Patch extraction: NCHW -> (M, K), row = (b, s1, s2), col = (c, ph, pw).
    # allow_input_fusion below lets XLA fuse this reshape/transpose/pad into
    # the pallas_call operand instead of a separate full-activation HBM pass.
    patches = x.reshape(B, C, S1, P, S2, P).transpose(0, 2, 4, 1, 3, 5).reshape(M, K)
    patches = jnp.pad(patches, ((0, M_pad - M), (0, K_pad - K)))  # zero rows/cols: no effect

    grid = (M_pad // tm, N_pad // tn)
    vmem_limit = int(min(48 * 1024 * 1024, max(need + (4 << 20), 16 << 20)))

    out = pl.pallas_call(
        _patch_embed_kernel,
        out_shape=jax.ShapeDtypeStruct((M_pad, N_pad), x.dtype),
        grid_spec=pltpu.PrefetchScalarGridSpec(
            num_scalar_prefetch=0,
            grid=grid,
            in_specs=[
                pl.BlockSpec((tm, K_pad), lambda i, j: (i, 0)),
                # Weight/bias blocks have constant-per-j index maps; Pallas skips
                # the re-DMA across i. (For very large weights, load-once into
                # scratch would also reclaim the second pipeline buffer.)
                pl.BlockSpec((K_pad, tn), lambda i, j: (0, j)),
                pl.BlockSpec((1, tn), lambda i, j: (0, j)),
            ],
            out_specs=pl.BlockSpec((tm, tn), lambda i, j: (i, j)),
        ),
        compiler_params=pltpu.CompilerParams(
            dimension_semantics=("parallel", "parallel"),
            vmem_limit_bytes=vmem_limit,
            allow_input_fusion=(True, True, True),
        ),
    )(patches, w_kn, b_1n)

    # 'b c s1 s2 -> b (s1 s2) c' — rows are already (b, s1, s2)-major, so this is
    # just a slice (drop padding) + reshape.
    return out[:M, :N].reshape(B, S1 * S2, N)


if __name__ == "__main__":
    # Small shapes consistent with the module: batch=2, in_channels=4,
    # spatial=16x16, patch_size=4, hidden_channels=32.
    B, C, H, W = 2, 4, 16, 16
    patch_size = 4
    hidden = 32

    key = jax.random.PRNGKey(0)
    kx, kw, kb = jax.random.split(key, 3)

    x = jax.random.normal(kx, (B, C, H, W), dtype=jnp.float32)
    # Deterministic synthetic parameters (same shapes as nn.Conv2d(C, hidden, P, P)).
    weight = jax.random.normal(kw, (hidden, C, patch_size, patch_size),
                               dtype=jnp.float32) * 0.05
    bias = jax.random.normal(kb, (hidden,), dtype=jnp.float32) * 0.05

    # One-time parameter packing (outside the hot path).
    w_kn, b_1n = prepare_patch_embed_params(weight, bias)

    y = full_per_patch(x, w_kn, b_1n, patch_size=patch_size, hidden_channels=hidden)
    jax.block_until_ready(y)

    # Sanity-check against a plain-JAX reference of the same math.
    S1, S2 = H // patch_size, W // patch_size
    patches = x.reshape(B, C, S1, patch_size, S2, patch_size)
    patches = patches.transpose(0, 2, 4, 1, 3, 5).reshape(B * S1 * S2, -1)
    ref = (patches @ weight.reshape(hidden, -1).T + bias).reshape(B, S1 * S2, hidden)
    assert y.shape == (B, S1 * S2, hidden)
    assert jnp.allclose(y, ref, atol=1e-4, rtol=1e-4)

    print("KERNEL_OK")
</pallas_src>

<mosaic_0001>
module attributes {stable_mosaic.version = 11 : i64} {
  func.func @_patch_embed_kernel(%arg0: i32, %arg1: i32, %arg2: memref<32x128xf32, #tpu.memory_space<vmem>>, %arg3: memref<128x128xf32, #tpu.memory_space<vmem>>, %arg4: memref<1x128xf32, #tpu.memory_space<vmem>>, %arg5: memref<32x128xf32, #tpu.memory_space<vmem>>) attributes {dimension_semantics = [#tpu.dimension_semantics<parallel>, #tpu.dimension_semantics<parallel>], iteration_bounds = array<i64: 1, 1>, scalar_prefetch = 0 : i64, scratch_operands = 0 : i64, tpu.core_type = #tpu.core_type<tc>, window_params = [{transform_indices = @transform_0, window_bounds = array<i64: 32, 128>}, {transform_indices = @transform_1, window_bounds = array<i64: 128, 128>}, {transform_indices = @transform_2, window_bounds = array<i64: 1, 128>}, {transform_indices = @transform_3, window_bounds = array<i64: 32, 128>}]} {
    %c0 = arith.constant 0 : index
    %c0_0 = arith.constant 0 : index
    %0 = vector.load %arg2[%c0, %c0_0] : memref<32x128xf32, #tpu.memory_space<vmem>>, vector<32x128xf32>
    %c0_1 = arith.constant 0 : index
    %c0_2 = arith.constant 0 : index
    %1 = vector.load %arg3[%c0_1, %c0_2] : memref<128x128xf32, #tpu.memory_space<vmem>>, vector<128x128xf32>
    %cst = arith.constant dense<0.000000e+00> : vector<32x128xf32>
    %2 = tpu.matmul %0, %1, %cst {dimension_numbers = #tpu.dot_dimension_numbers<[1], [0], [0], [1], [0, 0, 1, 1], [], []>} : vector<32x128xf32>, vector<128x128xf32>, vector<32x128xf32> -> vector<32x128xf32>
    %c0_3 = arith.constant 0 : index
    %c0_4 = arith.constant 0 : index
    %3 = vector.load %arg4[%c0_3, %c0_4] : memref<1x128xf32, #tpu.memory_space<vmem>>, vector<1x128xf32>
    %4 = vector.broadcast %3 : vector<1x128xf32> to vector<32x128xf32>
    %5 = arith.addf %2, %4 : vector<32x128xf32>
    %c0_5 = arith.constant 0 : index
    %c0_6 = arith.constant 0 : index
    %6 = vector.load %arg5[%c0_5, %c0_6] : memref<32x128xf32, #tpu.memory_space<vmem>>, vector<32x128xf32>
    tpu.vector_store %arg5[%c0_5, %c0_6], %5 {strides = array<i32>} : memref<32x128xf32, #tpu.memory_space<vmem>>, vector<32x128xf32>,
    return
  }
  func.func @transform_0(%arg0: i32, %arg1: i32) -> (i32, i32) {
    %c0_i32 = arith.constant 0 : i32
    %c0_i32_0 = arith.constant 0 : i32
    return %arg0, %c0_i32 : i32, i32
  }
  func.func @transform_1(%arg0: i32, %arg1: i32) -> (i32, i32) {
    %c0_i32 = arith.constant 0 : i32
    %c0_i32_0 = arith.constant 0 : i32
    return %c0_i32, %arg1 : i32, i32
  }
  func.func @transform_2(%arg0: i32, %arg1: i32) -> (i32, i32) {
    %c0_i32 = arith.constant 0 : i32
    %c0_i32_0 = arith.constant 0 : i32
    return %c0_i32, %arg1 : i32, i32
  }
  func.func @transform_3(%arg0: i32, %arg1: i32) -> (i32, i32) {
    %c0_i32 = arith.constant 0 : i32
    return %arg0, %arg1 : i32, i32
  }
}

</mosaic_0001>

<bundles_post_ra>
// kernel: full_per_patch.2
= control target key start
LH: loop header
LB: loop body
LE: loop exit
PB: predicated region body
PF: predicated region fallthrough
CT: control target
= control target key end

     0   :  { %s322_s0 = inlined_call_operand.vmem [shape: f32[128,128], index: 0, kind: input, shape index: {}]   ;;  %s323_s1 = inlined_call_operand.vmem [shape: f32[1,128], index: 1, kind: input, shape index: {}]   ;;  %s324_s2 = inlined_call_operand.vmem [shape: f32[32,64], index: 2, kind: input, shape index: {}]   ;;  %s325_s3 = inlined_call_operand.<no memory space> [shape: f32[], index: 3, kind: input, shape index: {}]   ;;  %s326_s4 = inlined_call_operand.hbm [shape: f32[32,128], index: 4, kind: output, shape index: {}]  }
   0x1   :  { %v246_v0 = vstv %s325_s3 }
   0x2   :  { %v78_v1 = vld [vmem:[%s322_s0 + $0x78] sm:$0xff]  ;;  %v77_v2 = vld [vmem:[%s322_s0 + $0x70] sm:$0xff]  ;;  %v76_v3 = vld [vmem:[%s322_s0 + $0x68] sm:$0xff] }
   0x3   :  { %138 = vmatpush.msra.mxu2 %v78_v1  ;;  %139 = vmatpush.msra.mxu3 %v78_v1  ;;  %v75_v4 = vld [vmem:[%s322_s0 + $0x60] sm:$0xff]  ;;  %v74_v5 = vld [vmem:[%s322_s0 + $0x58] sm:$0xff] }
   0x4   :  { %83 = vmatpush.msra.mxu0 %v78_v1  ;;  %137 = vmatpush.msra.mxu1 %v78_v1 }
   0x5   :  { %141 = vmatpush.msra.mxu2 %v77_v2  ;;  %142 = vmatpush.msra.mxu3 %v77_v2 }
   0x6   :  { %84 = vmatpush.msra.mxu0 %v77_v2  ;;  %140 = vmatpush.msra.mxu1 %v77_v2 }
   0x7   :  { %144 = vmatpush.msra.mxu2 %v76_v3  ;;  %145 = vmatpush.msra.mxu3 %v76_v3 }
   0x8   :  { %85 = vmatpush.msra.mxu0 %v76_v3  ;;  %143 = vmatpush.msra.mxu1 %v76_v3 }
   0x9   :  { %147 = vmatpush.msra.mxu2 %v75_v4  ;;  %148 = vmatpush.msra.mxu3 %v75_v4 }
   0xa   :  { %10 = vsyncpa [#allocation8], 0  ;;  %v73_v6 = vld [vmem:[%s322_s0 + $0x50] sm:$0xff]  ;;  %86 = vmatpush.msra.mxu0 %v75_v4  ;;  %146 = vmatpush.msra.mxu1 %v75_v4  ;;  %v72_v7 = vld [vmem:[%s322_s0 + $0x48] sm:$0xff]  ;;  %v18_v12 = vlaneseq  ;;  %s215_s29 = smov [#allocation7]   ;;  %s122_s7 = sshll.u32 %s326_s4, 4  ;;  %s123_s7 = int_to_ptr.hbm [resolvable:$true] %s122_s7 }
   0xb   :  { %150 = vmatpush.msra.mxu2 %v74_v5  ;;  %151 = vmatpush.msra.mxu3 %v74_v5  ;;  %v71_v8 = vld [vmem:[%s322_s0 + $0x40] sm:$0xff]  ;;  %v70_v9 = vld [vmem:[%s322_s0 + $0x38] sm:$0xff]  ;;  %v69_v10 = vld [vmem:[%s322_s0 + $0x30] sm:$0xff]  ;;  %s120_s30 = sshll.u32 %s215_s29, 4  ;;  %s217_s8 = smov 8   ;;  %s121_s30 = int_to_ptr.vmem [resolvable:$true] %s120_s30 }
   0xc   :  { %87 = vmatpush.msra.mxu0 %v74_v5  ;;  %149 = vmatpush.msra.mxu1 %v74_v5  ;;  %v68_v11 = vld [vmem:[%s322_s0 + $0x28] sm:$0xff]  ;;  %v67_v13 = vld [vmem:[%s322_s0 + $0x20] sm:$0xff]  ;;  %v66_v14 = vld [vmem:[%s322_s0 + $0x18] sm:$0xff]  ;;  %v19_v15 = vand.u32 127, %v18_v12 }
   0xd   :  { %153 = vmatpush.msra.mxu2 %v73_v6  ;;  %154 = vmatpush.msra.mxu3 %v73_v6  ;;  %v65_v16 = vld [vmem:[%s322_s0 + $0x10] sm:$0xff]  ;;  %v64_v17 = vld [vmem:[%s322_s0 + $0x8] sm:$0xff]  ;;  %v136_v19 = vld [vmem:[%s324_s2 + $0x18] sm:$0xff] }
   0xe   :  { %88 = vmatpush.msra.mxu0 %v73_v6  ;;  %152 = vmatpush.msra.mxu1 %v73_v6  ;;  %vm21_vm0 = vcmp.lt.s32.totalorder %v19_v15, 64  ;;  %v135_v18 = vld [vmem:[%s324_s2 + $0x10] sm:$0xff]  ;;  %v63_v20 = vld [vmem:[%s322_s0] sm:$0xff]  ;;  %v134_v22 = vld [vmem:[%s324_s2 + $0x8] sm:$0xff] }
   0xf   :  { %156 = vmatpush.msra.mxu2 %v72_v7  ;;  %157 = vmatpush.msra.mxu3 %v72_v7  ;;  %v17_v21 = vld [vmem:[%s324_s2] sm:$0xff]  ;;  %v43_v23 = vsel %vm21_vm0, %v135_v18, %v246_v0  ;;  %v54_v24 = vsel %vm21_vm0, %v136_v19, %v246_v0  ;;  %v32_v26 = vsel %vm21_vm0, %v134_v22, %v246_v0 }
  0x10   :  { %89 = vmatpush.msra.mxu0 %v72_v7  ;;  %155 = vmatpush.msra.mxu1 %v72_v7  ;;  %v22_v25 = vsel %vm21_vm0, %v17_v21, %v246_v0  ;;  %v188_v27 = vld [vmem:[%s323_s1] ss:$0 sm:$0xff]  ;;  %s216_s1 = smov 128  }
  0x11   :  { %159 = vmatpush.msra.mxu2 %v71_v8  ;;  %160 = vmatpush.msra.mxu3 %v71_v8 }
  0x12   :  { %90 = vmatpush.msra.mxu0 %v71_v8  ;;  %158 = vmatpush.msra.mxu1 %v71_v8 }
  0x13   :  { %162 = vmatpush.msra.mxu2 %v70_v9  ;;  %163 = vmatpush.msra.mxu3 %v70_v9 }
  0x14   :  { %91 = vmatpush.msra.mxu0 %v70_v9  ;;  %161 = vmatpush.msra.mxu1 %v70_v9 }
  0x15   :  { %165 = vmatpush.msra.mxu2 %v69_v10  ;;  %166 = vmatpush.msra.mxu3 %v69_v10 }
  0x16   :  { %92 = vmatpush.msra.mxu0 %v69_v10  ;;  %164 = vmatpush.msra.mxu1 %v69_v10 }
  0x17   :  { %168 = vmatpush.msra.mxu2 %v68_v11  ;;  %169 = vmatpush.msra.mxu3 %v68_v11 }
  0x18   :  { %93 = vmatpush.msra.mxu0 %v68_v11  ;;  %167 = vmatpush.msra.mxu1 %v68_v11 }
  0x19   :  { %171 = vmatpush.msra.mxu2 %v67_v13  ;;  %172 = vmatpush.msra.mxu3 %v67_v13 }
  0x1a   :  { %94 = vmatpush.msra.mxu0 %v67_v13  ;;  %170 = vmatpush.msra.mxu1 %v67_v13 }
  0x1b   :  { %174 = vmatpush.msra.mxu2 %v66_v14  ;;  %175 = vmatpush.msra.mxu3 %v66_v14 }
  0x1c   :  { %95 = vmatpush.msra.mxu0 %v66_v14  ;;  %173 = vmatpush.msra.mxu1 %v66_v14 }
  0x1d   :  { %177 = vmatpush.msra.mxu2 %v65_v16  ;;  %178 = vmatpush.msra.mxu3 %v65_v16 }
  0x1e   :  { %96 = vmatpush.msra.mxu0 %v65_v16  ;;  %176 = vmatpush.msra.mxu1 %v65_v16 }
  0x1f   :  { %180 = vmatpush.msra.mxu2 %v64_v17  ;;  %181 = vmatpush.msra.mxu3 %v64_v17 }
  0x20   :  { %97 = vmatpush.msra.mxu0 %v64_v17  ;;  %179 = vmatpush.msra.mxu1 %v64_v17 }
  0x21   :  { %183 = vmatpush.msra.mxu2 %v63_v20  ;;  %184 = vmatpush.msra.mxu3 %v63_v20 }
  0x22   :  { %105 = vmatmul.f32.vlgmr.msra.gmra.mxu2 %v43_v23  ;;  %108 = vmatmul.f32.vlgmr.msra.gmra.mxu3 %v54_v24 }
  0x23   :  { %98 = vmatpush.msra.mxu0 %v63_v20  ;;  %182 = vmatpush.msra.mxu1 %v63_v20 }
  0x24   :  { %99 = vmatmul.f32.vlgmr.msra.gmra.mxu0 %v22_v25  ;;  %102 = vmatmul.f32.vlgmr.msra.gmra.mxu1 %v32_v26 }
  0xa1   :  { %v100_v28 = vpop.f32.mrf.mxu0  ;;  %v103_v29 = vpop.f32.mrf.mxu1 }
  0xa2   :  { %v101_v30 = vadd.f32 %v188_v27, %v100_v28  ;;  %v104_v31 = vadd.f32 %v188_v27, %v103_v29 }
  0xa4   :  { %112 = vst [vmem:[#allocation7] sm:$0xff] %v101_v30 }
  0xa5   :  { %113 = vst [vmem:[#allocation7 + $0x8] sm:$0xff] %v104_v31  ;;  %v106_v32 = vpop.f32.mrf.mxu2  ;;  %v109_v33 = vpop.f32.mrf.mxu3 }
  0xa6   :  { %v107_v34 = vadd.f32 %v188_v27, %v106_v32  ;;  %v110_v35 = vadd.f32 %v188_v27, %v109_v33 }
  0xa8   :  { %114 = vst [vmem:[#allocation7 + $0x10] sm:$0xff] %v107_v34 }
  0xa9   :  { %115 = vst [vmem:[#allocation7 + $0x18] sm:$0xff] %v110_v35 }
  0xaa   :  { %128 = dma.vmem_to_hbm [thread:$0]  %s121_s30, 512, %s123_s7, [#allocation8], %s216_s1, %s216_s1, %s217_s8  }
  0xab   :  { %213 = dma.done.wait [#allocation8], 512  }
  0xac   :  { %214 = vsyncadd [#allocation8], 4294966784 }
  0xad   :  { %133 = vsyncpa [#allocation8], 1 }

</bundles_post_ra>
